<compile_context>
chip_gen: v5e
topology: v5e:2x2
jax: 0.10.0
libtpu: 0.0.40
codegen_flags: <defaults>
</compile_context>

<pallas_src>
import jax
import jax.numpy as jnp
from jax.experimental import pallas as pl
from jax.experimental.pallas import tpu as pltpu

# ----- module configuration (mirrors MLP.__init__) --------------------------
SEQ_LENGTH = 8
ANSATZ = "tanh_32_32"          # activation 'tanh', hidden_sizes = [32, 32]
DATA_LABEL = "lorenz"          # -> input_size = 3*seq_length, output_size = 3
ACTIVATION = ANSATZ.split("_")[0]
HIDDEN_SIZES = [int(n) for n in ANSATZ.split("_")[1:]]
INPUT_SIZE = 3 * SEQ_LENGTH
OUTPUT_SIZE = 3

LANE = 128                     # lane width: batch tiles are multiples of this
MAX_BATCH_TILE = 32 * 1024     # batch columns per grid step (sweepable)
VMEM_LIMIT_BYTES = 48 * 1024 * 1024   # < 64 MiB physical on v7x, ample on v5e/v6e


def _activation(x):
    if ACTIVATION == "tanh":
        return jnp.tanh(x)
    if ACTIVATION == "sigmoid":
        return jax.nn.sigmoid(x)
    if ACTIVATION == "relu":
        return jnp.maximum(x, 0.0)
    raise ValueError(f"Unsupported activation function: {ACTIVATION}")


def _round_up(n, m):
    return ((n + m - 1) // m) * m


# ----- fused MLP kernel (batch on lanes) -------------------------------------
def mlp_kernel(x_ref, w1_ref, b1_ref, w2_ref, b2_ref, w3_ref, b3_ref, o_ref):
    # x_ref: (INPUT_SIZE, tb); w*: (out, in); b*: (out, 1); o_ref: (OUTPUT_SIZE, tb)
    # All intermediates keep batch on the lane axis -> lane-dense VPU/EUP work.
    h = jnp.dot(w1_ref[...], x_ref[...], preferred_element_type=jnp.float32)   # (32, tb)
    h = _activation(h + b1_ref[...])
    h = jnp.dot(w2_ref[...], h, preferred_element_type=jnp.float32)            # (32, tb)
    h = _activation(h + b2_ref[...])
    o = jnp.dot(w3_ref[...], h, preferred_element_type=jnp.float32)            # (3, tb)
    o_ref[...] = (o + b3_ref[...]).astype(o_ref.dtype)


def _choose_batch_tile(b, batch_tile):
    """Batch-tile (lane axis): full extent for tiny batches, otherwise a
    multiple of 128 capped by `batch_tile`, aiming for >=2 grid steps."""
    if b <= LANE:
        return b                                   # single full-extent block
    cap = max(LANE, _round_up(min(batch_tile, MAX_BATCH_TILE), LANE))
    half = _round_up(pl.cdiv(b, 2), LANE)          # >=2 steps for v7x megacore
    return min(cap, half)


def mlp_forward(x, params, *, batch_tile=MAX_BATCH_TILE):
    """x: (batch, seq_length, 3) float32 -> (batch, 3) float32."""
    b = x.shape[0]
    # Lane-dense layout: batch on the last (lane) axis.  This transpose is the
    # only wrapper-side pass over x (no cast, no pad).
    x_t = x.reshape(b, -1).T                       # (INPUT_SIZE, b)
    (w1, b1), (w2, b2), (w3, b3) = params          # w: (out, in), b: (out, 1)

    tb = _choose_batch_tile(b, batch_tile)
    num_tiles = pl.cdiv(b, tb)                     # tail tile masked by Pallas

    h1, h2 = HIDDEN_SIZES
    cost = pl.CostEstimate(
        flops=2 * b * (INPUT_SIZE * h1 + h1 * h2 + h2 * OUTPUT_SIZE),
        transcendentals=(b * (h1 + h2)) if ACTIVATION in ("tanh", "sigmoid") else 0,
        bytes_accessed=b * (INPUT_SIZE + OUTPUT_SIZE) * 4
        + (INPUT_SIZE * h1 + h1 * h2 + h2 * OUTPUT_SIZE + h1 + h2 + OUTPUT_SIZE) * 4,
    )

    def resident(arr):
        # Full-array block, same block every grid step -> stays in VMEM.
        return pl.BlockSpec(arr.shape, lambda i: (0,) * arr.ndim)

    out_t = pl.pallas_call(
        mlp_kernel,
        out_shape=jax.ShapeDtypeStruct((OUTPUT_SIZE, b), jnp.float32),
        grid=(num_tiles,),
        in_specs=[
            pl.BlockSpec((INPUT_SIZE, tb), lambda i: (0, i)),   # x streamed over batch
            resident(w1), resident(b1),
            resident(w2), resident(b2),
            resident(w3), resident(b3),
        ],
        out_specs=pl.BlockSpec((OUTPUT_SIZE, tb), lambda i: (0, i)),
        compiler_params=pltpu.CompilerParams(
            dimension_semantics=("parallel",),      # megacore sharding on v7x
            vmem_limit_bytes=VMEM_LIMIT_BYTES,
        ),
        cost_estimate=cost,
    )(x_t, w1, b1, w2, b2, w3, b3)

    return out_t.T                                  # (batch, OUTPUT_SIZE)


# ----- deterministic parameter init (same shapes/layout as nn.Linear) --------
def init_params(key):
    sizes = [INPUT_SIZE] + HIDDEN_SIZES + [OUTPUT_SIZE]
    params = []
    for i in range(len(sizes) - 1):
        fan_in, fan_out = sizes[i], sizes[i + 1]
        key, kw, kb = jax.random.split(key, 3)
        bound = 1.0 / (fan_in ** 0.5)              # PyTorch Linear default bound
        w = jax.random.uniform(kw, (fan_out, fan_in), jnp.float32, -bound, bound)
        bias = jax.random.uniform(kb, (fan_out, 1), jnp.float32, -bound, bound)
        params.append((w, bias))
    return params


def mlp_reference(x, params):
    """Pure-JAX f32 reference (batch-major) for correctness checks."""
    h = x.reshape(x.shape[0], -1)
    for i, (w, bias) in enumerate(params):
        h = h @ w.T + bias.reshape(1, -1)
        if i < len(params) - 1:
            h = _activation(h)
    return h


if __name__ == "__main__":
    key = jax.random.PRNGKey(0)
    kp, k1, k2, k3 = jax.random.split(key, 4)
    params = init_params(kp)

    # --- small batch (single full-extent tile) -------------------------------
    batch = 2
    x = jax.random.normal(k1, (batch, SEQ_LENGTH, 3), jnp.float32)
    out = jax.block_until_ready(mlp_forward(x, params))
    ref = mlp_reference(x, params)
    assert out.shape == (batch, OUTPUT_SIZE)
    assert jnp.allclose(out, ref, atol=1e-4, rtol=1e-4)

    # --- multi-tile, evenly divisible (>=2 grid steps: feeds both v7x cores) --
    batch2 = 384
    x2 = jax.random.normal(k2, (batch2, SEQ_LENGTH, 3), jnp.float32)
    out2 = jax.block_until_ready(mlp_forward(x2, params, batch_tile=128))
    assert out2.shape == (batch2, OUTPUT_SIZE)
    assert jnp.allclose(out2, mlp_reference(x2, params), atol=1e-4, rtol=1e-4)

    # --- non-divisible batch: partial tail tile handled by Pallas masking -----
    batch3 = 300
    x3 = jax.random.normal(k3, (batch3, SEQ_LENGTH, 3), jnp.float32)
    out3 = jax.block_until_ready(mlp_forward(x3, params))
    assert out3.shape == (batch3, OUTPUT_SIZE)
    assert jnp.allclose(out3, mlp_reference(x3, params), atol=1e-4, rtol=1e-4)

    print("KERNEL_OK")
</pallas_src>

<mosaic_0001>
module attributes {stable_mosaic.version = 11 : i64} {
  func.func @mlp_kernel(%arg0: i32, %arg1: memref<24x2xf32, #tpu.memory_space<vmem>>, %arg2: memref<32x24xf32, #tpu.memory_space<vmem>>, %arg3: memref<32x1xf32, #tpu.memory_space<vmem>>, %arg4: memref<32x32xf32, #tpu.memory_space<vmem>>, %arg5: memref<32x1xf32, #tpu.memory_space<vmem>>, %arg6: memref<3x32xf32, #tpu.memory_space<vmem>>, %arg7: memref<3x1xf32, #tpu.memory_space<vmem>>, %arg8: memref<3x2xf32, #tpu.memory_space<vmem>>) attributes {dimension_semantics = [#tpu.dimension_semantics<parallel>], iteration_bounds = array<i64: 1>, scalar_prefetch = 0 : i64, scratch_operands = 0 : i64, tpu.core_type = #tpu.core_type<tc>, window_params = [{transform_indices = @transform_0, window_bounds = array<i64: 24, 2>}, {pipeline_mode = #tpu.pipeline_mode<synchronous>, transform_indices = @transform_1, window_bounds = array<i64: 32, 24>}, {pipeline_mode = #tpu.pipeline_mode<synchronous>, transform_indices = @transform_2, window_bounds = array<i64: 32, 1>}, {pipeline_mode = #tpu.pipeline_mode<synchronous>, transform_indices = @transform_3, window_bounds = array<i64: 32, 32>}, {pipeline_mode = #tpu.pipeline_mode<synchronous>, transform_indices = @transform_4, window_bounds = array<i64: 32, 1>}, {pipeline_mode = #tpu.pipeline_mode<synchronous>, transform_indices = @transform_5, window_bounds = array<i64: 3, 32>}, {pipeline_mode = #tpu.pipeline_mode<synchronous>, transform_indices = @transform_6, window_bounds = array<i64: 3, 1>}, {transform_indices = @transform_7, window_bounds = array<i64: 3, 2>}]} {
    %c0 = arith.constant 0 : index
    %c0_0 = arith.constant 0 : index
    %0 = vector.load %arg2[%c0, %c0_0] : memref<32x24xf32, #tpu.memory_space<vmem>>, vector<32x24xf32>
    %c0_1 = arith.constant 0 : index
    %c0_2 = arith.constant 0 : index
    %1 = vector.load %arg1[%c0_1, %c0_2] : memref<24x2xf32, #tpu.memory_space<vmem>>, vector<24x2xf32>
    %cst = arith.constant dense<0.000000e+00> : vector<32x2xf32>
    %2 = tpu.matmul %0, %1, %cst {dimension_numbers = #tpu.dot_dimension_numbers<[1], [0], [0], [1], [0, 0, 1, 1], [], []>} : vector<32x24xf32>, vector<24x2xf32>, vector<32x2xf32> -> vector<32x2xf32>
    %c0_3 = arith.constant 0 : index
    %c0_4 = arith.constant 0 : index
    %3 = vector.load %arg3[%c0_3, %c0_4] : memref<32x1xf32, #tpu.memory_space<vmem>>, vector<32x1xf32>
    %4 = vector.broadcast %3 : vector<32x1xf32> to vector<32x2xf32>
    %5 = arith.addf %2, %4 : vector<32x2xf32>
    %6 = math.tanh %5 : vector<32x2xf32>
    %c0_5 = arith.constant 0 : index
    %c0_6 = arith.constant 0 : index
    %7 = vector.load %arg4[%c0_5, %c0_6] : memref<32x32xf32, #tpu.memory_space<vmem>>, vector<32x32xf32>
    %cst_7 = arith.constant dense<0.000000e+00> : vector<32x2xf32>
    %8 = tpu.matmul %7, %6, %cst_7 {dimension_numbers = #tpu.dot_dimension_numbers<[1], [0], [0], [1], [0, 0, 1, 1], [], []>} : vector<32x32xf32>, vector<32x2xf32>, vector<32x2xf32> -> vector<32x2xf32>
    %c0_8 = arith.constant 0 : index
    %c0_9 = arith.constant 0 : index
    %9 = vector.load %arg5[%c0_8, %c0_9] : memref<32x1xf32, #tpu.memory_space<vmem>>, vector<32x1xf32>
    %10 = vector.broadcast %9 : vector<32x1xf32> to vector<32x2xf32>
    %11 = arith.addf %8, %10 : vector<32x2xf32>
    %12 = math.tanh %11 : vector<32x2xf32>
    %c0_10 = arith.constant 0 : index
    %c0_11 = arith.constant 0 : index
    %13 = vector.load %arg6[%c0_10, %c0_11] : memref<3x32xf32, #tpu.memory_space<vmem>>, vector<3x32xf32>
    %cst_12 = arith.constant dense<0.000000e+00> : vector<3x2xf32>
    %14 = tpu.matmul %13, %12, %cst_12 {dimension_numbers = #tpu.dot_dimension_numbers<[1], [0], [0], [1], [0, 0, 1, 1], [], []>} : vector<3x32xf32>, vector<32x2xf32>, vector<3x2xf32> -> vector<3x2xf32>
    %c0_13 = arith.constant 0 : index
    %c0_14 = arith.constant 0 : index
    %15 = vector.load %arg7[%c0_13, %c0_14] : memref<3x1xf32, #tpu.memory_space<vmem>>, vector<3x1xf32>
    %16 = vector.broadcast %15 : vector<3x1xf32> to vector<3x2xf32>
    %17 = arith.addf %14, %16 : vector<3x2xf32>
    %c0_15 = arith.constant 0 : index
    %c0_16 = arith.constant 0 : index
    %18 = vector.load %arg8[%c0_15, %c0_16] : memref<3x2xf32, #tpu.memory_space<vmem>>, vector<3x2xf32>
    tpu.vector_store %arg8[%c0_15, %c0_16], %17 {strides = array<i32>} : memref<3x2xf32, #tpu.memory_space<vmem>>, vector<3x2xf32>,
    return
  }
  func.func @transform_0(%arg0: i32) -> (i32, i32) {
    %c0_i32 = arith.constant 0 : i32
    %c0_i32_0 = arith.constant 0 : i32
    return %c0_i32, %arg0 : i32, i32
  }
  func.func @transform_1(%arg0: i32) -> (i32, i32) {
    %c0_i32 = arith.constant 0 : i32
    %c0_i32_0 = arith.constant 0 : i32
    %c0_i32_1 = arith.constant 0 : i32
    return %c0_i32, %c0_i32_0 : i32, i32
  }
  func.func @transform_2(%arg0: i32) -> (i32, i32) {
    %c0_i32 = arith.constant 0 : i32
    %c0_i32_0 = arith.constant 0 : i32
    %c0_i32_1 = arith.constant 0 : i32
    return %c0_i32, %c0_i32_0 : i32, i32
  }
  func.func @transform_3(%arg0: i32) -> (i32, i32) {
    %c0_i32 = arith.constant 0 : i32
    %c0_i32_0 = arith.constant 0 : i32
    %c0_i32_1 = arith.constant 0 : i32
    return %c0_i32, %c0_i32_0 : i32, i32
  }
  func.func @transform_4(%arg0: i32) -> (i32, i32) {
    %c0_i32 = arith.constant 0 : i32
    %c0_i32_0 = arith.constant 0 : i32
    %c0_i32_1 = arith.constant 0 : i32
    return %c0_i32, %c0_i32_0 : i32, i32
  }
  func.func @transform_5(%arg0: i32) -> (i32, i32) {
    %c0_i32 = arith.constant 0 : i32
    %c0_i32_0 = arith.constant 0 : i32
    %c0_i32_1 = arith.constant 0 : i32
    return %c0_i32, %c0_i32_0 : i32, i32
  }
  func.func @transform_6(%arg0: i32) -> (i32, i32) {
    %c0_i32 = arith.constant 0 : i32
    %c0_i32_0 = arith.constant 0 : i32
    %c0_i32_1 = arith.constant 0 : i32
    return %c0_i32, %c0_i32_0 : i32, i32
  }
  func.func @transform_7(%arg0: i32) -> (i32, i32) {
    %c0_i32 = arith.constant 0 : i32
    %c0_i32_0 = arith.constant 0 : i32
    return %c0_i32, %arg0 : i32, i32
  }
}

</mosaic_0001>

<bundles_post_ra>
// kernel: tpu_custom_call.1
= control target key start
LH: loop header
LB: loop body
LE: loop exit
PB: predicated region body
PF: predicated region fallthrough
CT: control target
= control target key end

     0   :  { %v249_v2 = vmov 0   ;;  %vm57_vm0 = vcmask 195584   ;;  %vm131_vm1 = vcmask 261120   ;;  %vm207_vm2 = vcmask 10240   ;;  %s365_s0 = inlined_call_operand.vmem [shape: f32[24,2], index: 0, kind: input, shape index: {}]   ;;  %s366_s2 = inlined_call_operand.vmem [shape: f32[32,1], index: 2, kind: input, shape index: {}]   ;;  %s367_s1 = inlined_call_operand.vmem [shape: f32[32,24], index: 1, kind: input, shape index: {}]   ;;  %s368_s4 = inlined_call_operand.vmem [shape: f32[32,1], index: 4, kind: input, shape index: {}]   ;;  %s369_s3 = inlined_call_operand.vmem [shape: f32[32,32], index: 3, kind: input, shape index: {}]   ;;  %s370_s6 = inlined_call_operand.vmem [shape: f32[3,1], index: 6, kind: input, shape index: {}]   ;;  %s371_s5 = inlined_call_operand.vmem [shape: f32[3,32], index: 5, kind: input, shape index: {}]   ;;  %s372_s7 = inlined_call_operand.vmem [shape: f32[3,2], index: 7, kind: output, shape index: {}]  }
   0x1   :  { %v32_v0 = vld [vmem:[%s365_s0 + $0x10] sm:$0xff]  ;;  %v31_v1 = vld [vmem:[%s365_s0 + $0x8] sm:$0xff]  ;;  %231 = vset.pattern.permute.xlu1 %v249_v2  ;;  %230 = vset.pattern.permute.xlu0 %v249_v2  ;;  %v36_v3 = vld [vmem:[%s366_s2 + $0x18] sm:$0xff] }
   0x2   :  { %83 = vmatpush.msra.mxu0 %v32_v0  ;;  %v34_v4 = vld [vmem:[%s366_s2 + $0x8] sm:$0xff]  ;;  %222 = vmatpush.msra.mxu1 %v32_v0  ;;  %v30_v5 = vld [vmem:[%s365_s0] sm:$0xff]  ;;  %v29_v7 = vld [vmem:[%s367_s1 + $0x18] sm:$0xff] }
   0x3   :  { %54 = vperm.xlu0 %230, %v36_v3   ;;  %44 = vperm.xlu1 %231, %v34_v4   ;;  %v26_v6 = vld [vmem:[%s367_s1] sm:$0xff]  ;;  %v35_v8 = vld [vmem:[%s366_s2 + $0x10] sm:$0xff]  ;;  %v27_v10 = vld [vmem:[%s367_s1 + $0x8] sm:$0xff] }
   0x4   :  { %84 = vmatpush.msra.mxu0 %v31_v1  ;;  %223 = vmatpush.msra.mxu1 %v31_v1  ;;  %v33_v9 = vld [vmem:[%s366_s2] sm:$0xff]  ;;  %v108_v11 = vld [vmem:[%s368_s4 + $0x8] sm:$0xff]  ;;  %v28_v13 = vld [vmem:[%s367_s1 + $0x10] sm:$0xff] }
   0x5   :  { %232 = vset.pattern.permute.xlu2 %v249_v2  ;;  %v107_v12 = vld [vmem:[%s368_s4] sm:$0xff]  ;;  %v110_v22 = vld [vmem:[%s368_s4 + $0x18] sm:$0xff]  ;;  %v109_v28 = vld [vmem:[%s368_s4 + $0x10] sm:$0xff] }
   0x6   :  { %85 = vmatpush.msra.mxu0 %v30_v5  ;;  %224 = vmatpush.msra.mxu1 %v30_v5  ;;  %v103_v31 = vld [vmem:[%s369_s3] sm:$0xff]  ;;  %v104_v32 = vld [vmem:[%s369_s3 + $0x8] sm:$0xff]  ;;  %v105_v35 = vld [vmem:[%s369_s3 + $0x10] sm:$0xff] }
   0x7   :  { %213 = vmatmul.msk.f32.vlgmr.msra.gmra.mxu0 %vm57_vm0, %v26_v6  ;;  %216 = vmatmul.msk.f32.vlgmr.msra.gmra.mxu1 %vm57_vm0, %v29_v7  ;;  %v178_v34 = vld [vmem:[%s370_s6] sm:$0x7]  ;;  %v106_v36 = vld [vmem:[%s369_s3 + $0x18] sm:$0xff] }
   0x8   :  { %128 = vperm.xlu2 %232, %v110_v22   ;;  %v177_v52 = vld [vmem:[%s371_s5] sm:$0x7] }
   0xb   :  { %49 = vperm.xlu0 %230, %v35_v8   ;;  %39 = vperm.xlu1 %231, %v33_v9  }
   0xf   :  { %214 = vmatmul.msk.f32.gmra.mxu0 %vm57_vm0, %v27_v10 }
  0x10   :  { %123 = vperm.xlu2 %232, %v109_v28  }
  0x13   :  { %118 = vperm.xlu0 %230, %v108_v11   ;;  %113 = vperm.xlu1 %231, %v107_v12  }
  0x17   :  { %215 = vmatmul.msk.f32.gmra.mxu0 %vm57_vm0, %v28_v13 }
  0x18   :  { %181 = vperm.xlu2 %232, %v178_v34  }
  0x62   :  { %v129_v38 = vpop.permute.xlu2 %128 }
  0x6a   :  { %v124_v40 = vpop.permute.xlu2 %123 }
  0x72   :  { %v182_v54 = vpop.permute.xlu2 %181 }
  0x75   :  { %v55_v14 = vpop.permute.xlu0 %54  ;;  %v45_v18 = vpop.permute.xlu1 %44 }
  0x7d   :  { %v50_v21 = vpop.permute.xlu0 %49  ;;  %v40_v23 = vpop.permute.xlu1 %39 }
  0x84   :  { %v87_v15 = vpop.f32.mrf.mxu0  ;;  %v96_v16 = vpop.f32.mrf.mxu1 }
  0x85   :  { %v97_v17 = vadd.f32 %v96_v16, %v55_v14  ;;  %v88_v27 = vadd.f32 %v87_v15, %v40_v23  ;;  %v119_v44 = vpop.permute.xlu0 %118  ;;  %v114_v47 = vpop.permute.xlu1 %113 }
  0x87   :  { %233 = vtanh.f32 %v97_v17 }
  0x8c   :  { %v90_v19 = vpop.f32.mrf.mxu0 }
  0x8d   :  { %v234_v20 = vpop.eup %233  ;;  %v91_v25 = vadd.f32 %v90_v19, %v45_v18 }
  0x8e   :  { %156 = vmatpush.msrb.mxu1 %v234_v20  ;;  %225 = vmatpush.msra.mxu3 %v234_v20 }
  0x94   :  { %v93_v24 = vpop.f32.mrf.mxu0 }
  0x95   :  { %v94_v26 = vadd.f32 %v93_v24, %v50_v21 }
  0x97   :  { %235 = vtanh.f32 %v94_v26 }
  0x98   :  { %237 = vtanh.f32 %v91_v25 }
  0x99   :  { %239 = vtanh.f32 %v88_v27 }
  0x9d   :  { %v236_v29 = vpop.eup %235 }
  0x9e   :  { %157 = vmatpush.msrb.mxu1 %v236_v29  ;;  %226 = vmatpush.msra.mxu3 %v236_v29  ;;  %v238_v30 = vpop.eup %237 }
  0x9f   :  { %v240_v33 = vpop.eup %239 }
  0xa0   :  { %158 = vmatpush.msrb.mxu1 %v238_v30  ;;  %227 = vmatpush.msra.mxu3 %v238_v30 }
  0xa2   :  { %159 = vmatpush.msrb.mxu1 %v240_v33  ;;  %228 = vmatpush.msra.mxu3 %v240_v33 }
  0xa3   :  { %217 = vmatmul.msk.f32.vlgmr.msrb.gmra.mxu1 %vm131_vm1, %v103_v31  ;;  %218 = vmatmul.msk.f32.vlgmr.msra.gmra.mxu3 %vm131_vm1, %v104_v32 }
  0xab   :  { %219 = vmatmul.msk.f32.gmra.mxu3 %vm131_vm1, %v105_v35 }
  0xb3   :  { %220 = vmatmul.msk.f32.gmra.mxu3 %vm131_vm1, %v106_v36 }
 0x120   :  { %v161_v45 = vpop.f32.mrf.mxu1 }
 0x121   :  { %v162_v48 = vadd.f32 %v161_v45, %v114_v47 }
 0x126   :  { %v164_v37 = vpop.f32.mrf.mxu3 }
 0x127   :  { %v165_v46 = vadd.f32 %v164_v37, %v119_v44 }
 0x12e   :  { %v167_v39 = vpop.f32.mrf.mxu3 }
 0x12f   :  { %v168_v42 = vadd.f32 %v167_v39, %v124_v40 }
 0x136   :  { %v170_v41 = vpop.f32.mrf.mxu3 }
 0x137   :  { %v171_v43 = vadd.f32 %v170_v41, %v129_v38 }
 0x139   :  { %241 = vtanh.f32 %v171_v43 }
 0x13a   :  { %243 = vtanh.f32 %v168_v42 }
 0x13b   :  { %245 = vtanh.f32 %v165_v46 }
 0x13c   :  { %247 = vtanh.f32 %v162_v48 }
 0x13f   :  { %v242_v49 = vpop.eup %241 }
 0x140   :  { %199 = vmatpush.msra.mxu2 %v242_v49  ;;  %v244_v50 = vpop.eup %243 }
 0x141   :  { %v246_v51 = vpop.eup %245 }
 0x142   :  { %200 = vmatpush.msra.mxu2 %v244_v50  ;;  %v248_v53 = vpop.eup %247 }
 0x144   :  { %201 = vmatpush.msra.mxu2 %v246_v51 }
 0x146   :  { %202 = vmatpush.msra.mxu2 %v248_v53 }
 0x147   :  { %221 = vmatmul.msk.f32.vlgmr.msra.gmra.mxu2 %vm131_vm1, %v177_v52 }
 0x1ca   :  { %v204_v55 = vpop.f32.mrf.mxu2 }
 0x1cb   :  { %v205_v56 = vadd.f32 %v204_v55, %v182_v54 }
 0x1cd   :  { %208 = vst.msk [vmem:[%s372_s7] sm:$0x7] %vm207_vm2, %v205_v56 }

</bundles_post_ra>
